<compile_context>
chip_gen: v6e
topology: v6e:2x2x1
jax: 0.10.0
libtpu: 0.0.40
codegen_flags: <defaults>
</compile_context>

<pallas_src>
import functools

import jax
import jax.numpy as jnp
from jax.experimental import pallas as pl
from jax.experimental.pallas import tpu as pltpu


# ---------------------------------------------------------------------------
# VMEM budgeting (per-generation)
# ---------------------------------------------------------------------------
def _vmem_plan():
    """Returns (vmem_limit, pool_tile_target, scale_tile_target, fused_budget)."""
    cap = 64 << 20  # conservative fallback: v7x per-TC physical VMEM
    try:
        info = pltpu.get_tpu_info()
        c = int(getattr(info, "vmem_capacity_bytes", 0) or 0)
        if c > 0:
            cap = c
    except Exception:
        pass
    # 48 MiB on v7x (64 MiB physical), 96 MiB on v5e/v6e (128 MiB physical).
    vmem_limit = min((cap * 3) // 4, 96 << 20)
    pool_tile_target = vmem_limit // 4   # 2 double-buffered input blocks <= limit/2
    scale_tile_target = vmem_limit // 8  # 2 in + 2 out blocks            <= limit/2
    fused_budget = vmem_limit - (8 << 20)
    return vmem_limit, pool_tile_target, scale_tile_target, fused_budget


def _pick_spatial_tile(S, C, itemsize, target_bytes):
    """Largest multiple-of-128 spatial tile with one (C, TS) block <= target_bytes.

    No divisibility requirement on S: grids use pl.cdiv and the last (partial)
    tile is handled with a lane mask / masked output writeback.
    """
    if S <= 128:
        return S
    per_lane = max(1, C * itemsize)
    max_ts = max(128, (target_bytes // per_lane) // 128 * 128)
    ts = min(max_ts, (S // 128) * 128)
    return max(ts, 128)


# ---------------------------------------------------------------------------
# Kernels
# ---------------------------------------------------------------------------
def _fused_kernel(x_ref, w1_ref, b1_ref, w2_ref, b2_ref, o_ref, *, inv_spatial):
    """Single pass per sample: pool + excite + scale on a resident (C, S) slab."""
    x = x_ref[0]                                                      # (C, S)
    pooled = jnp.sum(x.astype(jnp.float32), axis=-1, keepdims=True) * inv_spatial
    h = jnp.dot(w1_ref[...], pooled,
                preferred_element_type=jnp.float32) + b1_ref[...]     # (C, 1)
    h = jnp.maximum(h, 0.0)                                           # ReLU
    z = jnp.dot(w2_ref[...], h,
                preferred_element_type=jnp.float32) + b2_ref[...]
    s = jax.nn.sigmoid(z)                                             # (C, 1) f32
    o_ref[0] = x * s.astype(x.dtype)


def _pool_partial_kernel(x_ref, part_ref, *, S, TS, Tp, needs_mask):
    """Accumulate per-channel f32 sums for spatial chunk p across its tiles t."""
    p = pl.program_id(1)
    t = pl.program_id(2)

    @pl.when(t == 0)
    def _():
        part_ref[...] = jnp.zeros_like(part_ref)

    x = x_ref[0].astype(jnp.float32)                                  # (C, TS)
    if needs_mask:
        lane = jax.lax.broadcasted_iota(jnp.int32, x.shape, 1)
        valid = (p * Tp + t) * TS + lane < S
        x = jnp.where(valid, x, 0.0)
    part_ref[...] += jnp.sum(x, axis=-1, keepdims=True)[None, None]   # (1,1,C,1)


def _scale_kernel(x_ref, s_ref, o_ref):
    """out = x * s, s lane-broadcast over the spatial axis."""
    o_ref[0] = x_ref[0] * s_ref[0].astype(x_ref.dtype)                # (C,TS)*(C,1)


# ---------------------------------------------------------------------------
# Wrapper
# ---------------------------------------------------------------------------
def se_block(x_ncdhw, w1, b1, w2, b2, *, force_path=None):
    """SEBlock forward.

    x_ncdhw : (N, C, D, H, W)
    w1, w2  : (C_out, C_in, 1, 1, 1) Conv3d weights (C_out == C_in)
    b1, b2  : (C_out,) Conv3d biases
    force_path : None | "fused" | "two_pass"  (testing hook)
    """
    N, C, D, H, W = x_ncdhw.shape
    S = D * H * W
    Cout = w1.shape[0]
    # TODO(synk): the PyTorch module as written is only well-formed when
    # out_channels == in_channels (conv2 consumes conv1's output); keep that.
    assert Cout == C, "SEBlock requires out_channels == in_channels"

    x = x_ncdhw.reshape(N, C, S)          # free reshape: native layout, no transposes
    itemsize = jnp.dtype(x.dtype).itemsize

    # Keep weights in their native dtype (bf16 stays bf16 -> half the VMEM
    # footprint, native MXU input); biases are tiny, promote to f32 once.
    w1m = w1.reshape(C, C)
    w2m = w2.reshape(C, C)
    b1c = b1.reshape(C, 1).astype(jnp.float32)
    b2c = b2.reshape(C, 1).astype(jnp.float32)

    vmem_limit, pool_target, scale_target, fused_budget = _vmem_plan()

    slab_bytes = C * S * itemsize
    w_bytes = 2 * C * C * jnp.dtype(w1m.dtype).itemsize
    # 2 in + 2 out slab buffers, an f32 reduction temp, double-buffered weights.
    fused_vmem_est = 4 * slab_bytes + C * S * 4 + 2 * w_bytes + (1 << 20)

    use_fused = fused_vmem_est <= fused_budget
    if force_path == "fused":
        use_fused = True
    elif force_path == "two_pass":
        use_fused = False

    if use_fused:
        # ---- Fused single-pass path: read x once, write out once (2x traffic).
        out = pl.pallas_call(
            functools.partial(_fused_kernel, inv_spatial=1.0 / float(S)),
            out_shape=jax.ShapeDtypeStruct((N, C, S), x.dtype),
            grid_spec=pltpu.PrefetchScalarGridSpec(
                num_scalar_prefetch=0,
                grid=(N,),
                in_specs=[
                    pl.BlockSpec((1, C, S), lambda n: (n, 0, 0)),   # x slab
                    pl.BlockSpec((C, C), lambda n: (0, 0)),         # W1
                    pl.BlockSpec((C, 1), lambda n: (0, 0)),         # b1
                    pl.BlockSpec((C, C), lambda n: (0, 0)),         # W2
                    pl.BlockSpec((C, 1), lambda n: (0, 0)),         # b2
                ],
                out_specs=pl.BlockSpec((1, C, S), lambda n: (n, 0, 0)),
            ),
            compiler_params=pltpu.CompilerParams(
                dimension_semantics=("parallel",),
                vmem_limit_bytes=vmem_limit),
        )(x, w1m, b1c, w2m, b2c)
        return out.reshape(N, C, D, H, W)

    # ---- Two-pass path ------------------------------------------------------
    # Pass 1: partial per-channel sums. Larger tiles (only the input streams).
    TSp = _pick_spatial_tile(S, C, itemsize, pool_target)
    T = pl.cdiv(S, TSp)
    # Split the spatial reduction into 2 "parallel" chunks when the batch alone
    # cannot occupy both TensorCores (v7x megacore); combine happens in XLA.
    P = 2 if (N % 2 == 1 and T >= 2) else 1
    Tp = pl.cdiv(T, P)
    needs_mask = (P * Tp * TSp) != S

    part = pl.pallas_call(
        functools.partial(_pool_partial_kernel, S=S, TS=TSp, Tp=Tp,
                          needs_mask=needs_mask),
        out_shape=jax.ShapeDtypeStruct((N, P, C, 1), jnp.float32),
        grid_spec=pltpu.PrefetchScalarGridSpec(
            num_scalar_prefetch=0,
            grid=(N, P, Tp),
            in_specs=[
                pl.BlockSpec((1, C, TSp), lambda n, p, t: (n, 0, p * Tp + t)),
            ],
            out_specs=pl.BlockSpec((1, 1, C, 1), lambda n, p, t: (n, p, 0, 0)),
        ),
        compiler_params=pltpu.CompilerParams(
            dimension_semantics=("parallel", "parallel", "arbitrary"),
            vmem_limit_bytes=vmem_limit),
    )(x)

    # Excitation: tiny batched channel matmuls, left to plain XLA (proper MXU
    # shape, keeps pass-1 VMEM free of the (C, C) weights).
    pooled = jnp.sum(part[..., 0], axis=1) * (1.0 / float(S))         # (N, C) f32
    h = jnp.maximum(pooled @ w1m.T.astype(jnp.float32) + b1.astype(jnp.float32), 0.0)
    z = h @ w2m.T.astype(jnp.float32) + b2.astype(jnp.float32)
    s = jax.nn.sigmoid(z).reshape(N, C, 1)                            # (N, C, 1) f32

    # Pass 2: out = x * s. Smaller tiles (in + out both stream), fully parallel.
    TSs = _pick_spatial_tile(S, C, itemsize, scale_target)
    Ts = pl.cdiv(S, TSs)
    out = pl.pallas_call(
        _scale_kernel,
        out_shape=jax.ShapeDtypeStruct((N, C, S), x.dtype),
        grid_spec=pltpu.PrefetchScalarGridSpec(
            num_scalar_prefetch=0,
            grid=(N, Ts),
            in_specs=[
                pl.BlockSpec((1, C, TSs), lambda n, t: (n, 0, t)),    # x tile
                pl.BlockSpec((1, C, 1), lambda n, t: (n, 0, 0)),      # s (per sample)
            ],
            out_specs=pl.BlockSpec((1, C, TSs), lambda n, t: (n, 0, t)),
        ),
        compiler_params=pltpu.CompilerParams(
            dimension_semantics=("parallel", "parallel"),
            vmem_limit_bytes=vmem_limit),
    )(x, s)

    return out.reshape(N, C, D, H, W)


# ---------------------------------------------------------------------------
# Pure-JAX reference and self-test
# ---------------------------------------------------------------------------
def _reference(x, w1, b1, w2, b2):
    N, C = x.shape[:2]
    pooled = jnp.mean(x, axis=(2, 3, 4))                              # (N, C)
    h = jnp.maximum(pooled @ w1.reshape(C, C).T + b1, 0.0)            # conv1 + ReLU
    s = jax.nn.sigmoid(h @ w2.reshape(C, C).T + b2)                   # conv2 + sigmoid
    return x * s[:, :, None, None, None]


if __name__ == "__main__":
    key = jax.random.PRNGKey(0)
    kx, k1, k2, k3, k4, kx2 = jax.random.split(key, 6)

    def make_params(C, keys):
        ka, kb, kc, kd = keys
        w1 = jax.random.normal(ka, (C, C, 1, 1, 1), dtype=jnp.float32) * 0.1
        b1 = jax.random.normal(kb, (C,), dtype=jnp.float32) * 0.1
        w2 = jax.random.normal(kc, (C, C, 1, 1, 1), dtype=jnp.float32) * 0.1
        b2 = jax.random.normal(kd, (C,), dtype=jnp.float32) * 0.1
        return w1, b1, w2, b2

    # Case 1: small, 128-aligned spatial -> fused single-pass path.
    N, C, D, H, W = 2, 4, 8, 8, 8
    x = jax.random.normal(kx, (N, C, D, H, W), dtype=jnp.float32)
    w1, b1, w2, b2 = make_params(C, (k1, k2, k3, k4))
    out = jax.block_until_ready(se_block(x, w1, b1, w2, b2))
    ref = _reference(x, w1, b1, w2, b2)
    assert out.shape == x.shape
    assert jnp.allclose(out, ref, atol=1e-5, rtol=1e-5)

    # Case 2: same shapes, force the streaming two-pass path.
    out2 = jax.block_until_ready(se_block(x, w1, b1, w2, b2, force_path="two_pass"))
    assert jnp.allclose(out2, ref, atol=1e-5, rtol=1e-5)

    # Case 3: batch 1, non-128-aligned spatial (S = 210) -> masked last tile +
    # 2-way parallel spatial split in the pool pass + partial output blocks.
    N3, C3, D3, H3, W3 = 1, 8, 5, 6, 7
    x3 = jax.random.normal(kx2, (N3, C3, D3, H3, W3), dtype=jnp.float32)
    kk = jax.random.split(k4, 4)
    w1b, b1b, w2b, b2b = make_params(C3, tuple(kk))
    out3 = jax.block_until_ready(
        se_block(x3, w1b, b1b, w2b, b2b, force_path="two_pass"))
    ref3 = _reference(x3, w1b, b1b, w2b, b2b)
    assert out3.shape == x3.shape
    assert jnp.allclose(out3, ref3, atol=1e-5, rtol=1e-5)

    print("KERNEL_OK")
</pallas_src>

<mosaic_0001>
module attributes {stable_mosaic.version = 11 : i64} {
  func.func @_fused_kernel(%arg0: i32, %arg1: memref<1x4x512xf32, #tpu.memory_space<vmem>>, %arg2: memref<4x4xf32, #tpu.memory_space<vmem>>, %arg3: memref<4x1xf32, #tpu.memory_space<vmem>>, %arg4: memref<4x4xf32, #tpu.memory_space<vmem>>, %arg5: memref<4x1xf32, #tpu.memory_space<vmem>>, %arg6: memref<1x4x512xf32, #tpu.memory_space<vmem>>) attributes {dimension_semantics = [#tpu.dimension_semantics<parallel>], iteration_bounds = array<i64: 2>, scalar_prefetch = 0 : i64, scratch_operands = 0 : i64, tpu.core_type = #tpu.core_type<tc>, window_params = [{transform_indices = @transform_0, window_bounds = array<i64: 1, 4, 512>}, {pipeline_mode = #tpu.pipeline_mode<synchronous>, transform_indices = @transform_1, window_bounds = array<i64: 4, 4>}, {pipeline_mode = #tpu.pipeline_mode<synchronous>, transform_indices = @transform_2, window_bounds = array<i64: 4, 1>}, {pipeline_mode = #tpu.pipeline_mode<synchronous>, transform_indices = @transform_3, window_bounds = array<i64: 4, 4>}, {pipeline_mode = #tpu.pipeline_mode<synchronous>, transform_indices = @transform_4, window_bounds = array<i64: 4, 1>}, {transform_indices = @transform_5, window_bounds = array<i64: 1, 4, 512>}]} {
    %c0 = arith.constant 0 : index
    %c0_0 = arith.constant 0 : index
    %c0_1 = arith.constant 0 : index
    %0 = vector.load %arg1[%c0, %c0_0, %c0_1] : memref<1x4x512xf32, #tpu.memory_space<vmem>>, vector<1x4x512xf32>
    %1 = vector.shape_cast %0 : vector<1x4x512xf32> to vector<4x512xf32>
    %cst = arith.constant dense<0.000000e+00> : vector<4xf32>
    %2 = vector.multi_reduction <add>, %1, %cst [1] : vector<4x512xf32> to vector<4xf32>
    %3 = vector.shape_cast %2 : vector<4xf32> to vector<4x1xf32>
    %cst_2 = arith.constant 0.001953125 : f32
    %4 = vector.broadcast %cst_2 : f32 to vector<4x1xf32>
    %5 = arith.mulf %3, %4 : vector<4x1xf32>
    %c0_3 = arith.constant 0 : index
    %c0_4 = arith.constant 0 : index
    %6 = vector.load %arg2[%c0_3, %c0_4] : memref<4x4xf32, #tpu.memory_space<vmem>>, vector<4x4xf32>
    %cst_5 = arith.constant dense<0.000000e+00> : vector<4x1xf32>
    %7 = tpu.matmul %6, %5, %cst_5 {dimension_numbers = #tpu.dot_dimension_numbers<[1], [0], [0], [1], [0, 0, 1, 1], [], []>} : vector<4x4xf32>, vector<4x1xf32>, vector<4x1xf32> -> vector<4x1xf32>
    %c0_6 = arith.constant 0 : index
    %c0_7 = arith.constant 0 : index
    %8 = vector.load %arg3[%c0_6, %c0_7] : memref<4x1xf32, #tpu.memory_space<vmem>>, vector<4x1xf32>
    %9 = arith.addf %7, %8 : vector<4x1xf32>
    %cst_8 = arith.constant 0.000000e+00 : f32
    %10 = vector.broadcast %cst_8 : f32 to vector<4x1xf32>
    %11 = arith.maximumf %9, %10 : vector<4x1xf32>
    %c0_9 = arith.constant 0 : index
    %c0_10 = arith.constant 0 : index
    %12 = vector.load %arg4[%c0_9, %c0_10] : memref<4x4xf32, #tpu.memory_space<vmem>>, vector<4x4xf32>
    %cst_11 = arith.constant dense<0.000000e+00> : vector<4x1xf32>
    %13 = tpu.matmul %12, %11, %cst_11 {dimension_numbers = #tpu.dot_dimension_numbers<[1], [0], [0], [1], [0, 0, 1, 1], [], []>} : vector<4x4xf32>, vector<4x1xf32>, vector<4x1xf32> -> vector<4x1xf32>
    %c0_12 = arith.constant 0 : index
    %c0_13 = arith.constant 0 : index
    %14 = vector.load %arg5[%c0_12, %c0_13] : memref<4x1xf32, #tpu.memory_space<vmem>>, vector<4x1xf32>
    %15 = arith.addf %13, %14 : vector<4x1xf32>
    %16 = arith.negf %15 : vector<4x1xf32>
    %17 = math.exp %16 : vector<4x1xf32>
    %cst_14 = arith.constant 1.000000e+00 : f32
    %18 = vector.broadcast %cst_14 : f32 to vector<4x1xf32>
    %19 = arith.addf %18, %17 : vector<4x1xf32>
    %20 = arith.divf %18, %19 : vector<4x1xf32>
    %21 = vector.broadcast %20 : vector<4x1xf32> to vector<4x512xf32>
    %22 = arith.mulf %1, %21 : vector<4x512xf32>
    %c0_15 = arith.constant 0 : index
    %c0_16 = arith.constant 0 : index
    %c0_17 = arith.constant 0 : index
    %23 = vector.load %arg6[%c0_15, %c0_16, %c0_17] : memref<1x4x512xf32, #tpu.memory_space<vmem>>, vector<1x4x512xf32>
    %24 = vector.shape_cast %23 : vector<1x4x512xf32> to vector<4x512xf32>
    %25 = vector.shape_cast %22 : vector<4x512xf32> to vector<1x4x512xf32>
    tpu.vector_store %arg6[%c0_15, %c0_16, %c0_17], %25 {strides = array<i32>} : memref<1x4x512xf32, #tpu.memory_space<vmem>>, vector<1x4x512xf32>,
    return
  }
  func.func @transform_0(%arg0: i32) -> (i32, i32, i32) {
    %c0_i32 = arith.constant 0 : i32
    %c0_i32_0 = arith.constant 0 : i32
    %c0_i32_1 = arith.constant 0 : i32
    return %arg0, %c0_i32, %c0_i32_0 : i32, i32, i32
  }
  func.func @transform_1(%arg0: i32) -> (i32, i32) {
    %c0_i32 = arith.constant 0 : i32
    %c0_i32_0 = arith.constant 0 : i32
    %c0_i32_1 = arith.constant 0 : i32
    return %c0_i32, %c0_i32_0 : i32, i32
  }
  func.func @transform_2(%arg0: i32) -> (i32, i32) {
    %c0_i32 = arith.constant 0 : i32
    %c0_i32_0 = arith.constant 0 : i32
    %c0_i32_1 = arith.constant 0 : i32
    return %c0_i32, %c0_i32_0 : i32, i32
  }
  func.func @transform_3(%arg0: i32) -> (i32, i32) {
    %c0_i32 = arith.constant 0 : i32
    %c0_i32_0 = arith.constant 0 : i32
    %c0_i32_1 = arith.constant 0 : i32
    return %c0_i32, %c0_i32_0 : i32, i32
  }
  func.func @transform_4(%arg0: i32) -> (i32, i32) {
    %c0_i32 = arith.constant 0 : i32
    %c0_i32_0 = arith.constant 0 : i32
    %c0_i32_1 = arith.constant 0 : i32
    return %c0_i32, %c0_i32_0 : i32, i32
  }
  func.func @transform_5(%arg0: i32) -> (i32, i32, i32) {
    %c0_i32 = arith.constant 0 : i32
    %c0_i32_0 = arith.constant 0 : i32
    %c0_i32_1 = arith.constant 0 : i32
    return %arg0, %c0_i32, %c0_i32_0 : i32, i32, i32
  }
}

</mosaic_0001>

<bundles_post_ra>
// kernel: tpu_custom_call.1
= control target key start
LH: loop header
LB: loop body
LE: loop exit
PB: predicated region body
PF: predicated region fallthrough
CT: control target
= control target key end

     0   :  { %10 = vsyncpa [#allocation3], 0  ;;  %s916_s0 = inlined_call_operand.hbm [shape: f32[2,4,512], index: 0, kind: input, shape index: {}]   ;;  %s917_s1 = inlined_call_operand.vmem [shape: f32[4,4], index: 1, kind: input, shape index: {}]   ;;  %s918_s2 = inlined_call_operand.vmem [shape: f32[4,1], index: 2, kind: input, shape index: {}]   ;;  %s919_s3 = inlined_call_operand.vmem [shape: f32[4,4], index: 3, kind: input, shape index: {}]   ;;  %s920_s4 = inlined_call_operand.vmem [shape: f32[4,1], index: 4, kind: input, shape index: {}]   ;;  %s921_s5 = inlined_call_operand.hbm [shape: f32[2,4,512], index: 5, kind: output, shape index: {}]  }
   0x1   :  { %12 = vsyncpa [#allocation3 + $0x1], 0 }
   0x2   :  { %13 = vsyncpa [#allocation4], 0 }
   0x3   :  { %15 = vsyncpa [#allocation4 + $0x1], 0  ;;  %s747_s18 = smov 0   ;;  %s749_s19 = smov 0  }
   0x4   :  { %s751_s20 = smov 0   ;;  %s753_s21 = smov 0  }
   0x5 LB: > { %s768_s22 = sadd.s32 4294967295, %s709_s21   ;;  %s525_s23 = sadd.s32 4294967294, %s709_s21   ;;  %s709_s21 = sphi %s753_s21, %s938_s21   ;;  %s705_s20 = sphi %s751_s20, %s937_s20   ;;  %s701_s19 = sphi %s749_s19, %s936_s19   ;;  %s697_s18 = sphi %s747_s18, %s935_s18  }
   0x6   : > { %s772_s24 = sadd.s32 1, %s709_s21   ;;  %s28_s25 = sadd.s32 1, %s705_s20 }
   0x7   : > { %s25_s26 = ssub.s32 %s709_s21, %s772_s24  ;;  %p35_p0 = scmp.ne.s32.totalorder %s705_s20, %s701_s19 }
   0x8   : > { %p26_p1 = scmp.eq.s32.totalorder %s25_s26, 0  ;;  %p36_p2 = scmp.eq.s32.totalorder %s709_s21, 0 }
   0x9   : > { %p41_p3 = scmp.ne.s32.totalorder %s701_s19, %s697_s18  ;;  %p42_p4 = scmp.eq.s32.totalorder %s768_s22, 0 }
   0xa   : > { %s784_s27 = scalar_select %p26_p1, %s705_s20, %s28_s25  }
   0xb   : > { %p786_p5 = por %p36_p2, %p35_p0  ;;  %p790_p6 = por %p42_p4, %p41_p3 }
   0xc   : > { %p149_p7 = scmp.eq.s32.totalorder %s768_s22, 1  ;;  %p155_p8 = scmp.eq.s32.totalorder %s525_s23, 1 }
   0xd   : > { %s925_s29 = scalar_select %p790_p6, 1, 0 }
   0xe   : > { %p572_p10 = scmp.lt.s32.totalorder %s709_s21, 2  ;;  %p797_p11 = por %p149_p7, %p35_p0 }
   0xf   : > { %p801_p12 = por %p155_p8, %p41_p3  ;;  %s187_s7 = sand.u32 1, %s705_s20  }
  0x10   : > { %s926_s30 = scalar_select %p797_p11, 1, 0 }
  0x11   : > { %s927_s6 = scalar_select %p801_p12, 1, 0 }
  0x12   : > { %s544_s8 = sshll.u32 %s709_s21, 8  ;;  %s528_s9 = sshll.u32 %s187_s7, 4 }
  0x13   : > { %s810_s12 = scalar_lea.hbm %s916_s0, %s544_s8  ;;  %s191_s13 = scalar_lea.vmem [#allocation2], %s528_s9 }
  0x14   : > { %s199_s14 = sshll.u32 %s191_s13, 4  ;;  %p814_p13 = pnand %p572_p10, %p786_p5  ;;  %s818_s14 = int_to_ptr.vmem [resolvable:$true] %s199_s14 }
  0x15   : > { %s188_s16 = scalar_lea.sflag [#allocation3], %s187_s7  ;;  %s617_s17 = scalar_lea.hbm %s810_s12, 256 }
  0x16   : > { %p618_p2 = scmp.ne.s32.totalorder %s810_s12, %s617_s17  ;;  %p619_p3 = pneg %p814_p13 }
  0x17   : > { %s622_s26 = scalar_lea.hbm %s916_s0, 512  ;;  %p623_p5 = scmp.lt.s32.totalorder %s810_s12, %s916_s0 }
  0x18   : > { %p620_p4 = pnand %p619_p3, %p618_p2  ;;  %p624_p8 = scmp.lt.s32.totalorder %s622_s26, %s617_s17 }
  0x1a   : > { %p621_p7 = pneg %p620_p4  ;;  %p625_p10 = por %p624_p8, %p623_p5 }
  0x1c   : > { %p626_p9 = pnand %p625_p10, %p621_p7 }
  0x1e   : > { %629 = shalt.err (!%p626_p9)
}
  0x1f   : > { %s630_s7 = scalar_lea.vmem %s818_s14, 256  ;;  %s711_s9 = smov [#allocation2]  }
  0x20   : > { %p631_p0 = scmp.ne.s32.totalorder %s818_s14, %s630_s7  ;;  %s635_s10 = sshll.u32 %s711_s9, 4  ;;  %s636_s10 = int_to_ptr.vmem [resolvable:$false] %s635_s10 }
  0x21   : > { %s637_s11 = scalar_lea.vmem %s636_s10, 512  ;;  %p638_p4 = scmp.lt.s32.totalorder %s818_s14, %s636_s10 }
  0x22   : > { %p633_p1 = pnand %p631_p0, %p619_p3  ;;  %p639_p12 = scmp.lt.s32.totalorder %s637_s11, %s630_s7 }
  0x24   : > { %p634_p2 = pneg %p633_p1  ;;  %p640_p11 = por %p639_p12, %p638_p4 }
  0x26   : > { %p641_p6 = pnand %p640_p11, %p634_p2 }
  0x28   : > { %644 = shalt.err (!%p641_p6)
}
  0x29   : > { %567 = dma.hbm_to_vmem [thread:$0]  (!%p814_p13), %s810_s12, 256, %s818_s14, %s188_s16  }
  0x2a   : > { %p929_p9 = scmp.lt.s32.totalorder %s709_s21, 3  ;;  %p930_p7 = scmp.ge.s32.totalorder %s709_s21, 1 }
  0x2c   : > { %p205_p0 = pnand %p930_p7, %p929_p9 }
  0x2d   : > { %s845_s13 = sand.u32 (!%p205_p0), 1, %s701_s19   ;;  %p931_p6 = scmp.ne.s32.totalorder (!%p205_p0), %s925_s29, 0 }
  0x2e   : > { %208 = sbr.rel (%p205_p0) target bundleno = 769 (0x301), region = 40  ;;  %s532_s17 = sshll.u32 (!%p205_p0), %s845_s13, 4 }
  0x2f   : > { %s211_s23 = scalar_lea.sflag (!%p205_p0), [#allocation3], %s845_s13  ;;  %s214_s15 = scalar_lea.vmem (!%p205_p0), [#allocation2], %s532_s17 }
  0x33   : > { %688 = dma.done.wait (%p931_p6), %s211_s23, 256  }
  0x34   : > { %690 = vsyncadd (%p931_p6), %s211_s23, 4294967040  ;;  %vm249_vm0 = vcmask 1043456   ;;  %v241_v0 = vld [vmem:[%s214_s15] sm:$0xff]  ;;  %v242_v1 = vld [vmem:[%s214_s15 + $0x8] sm:$0xff]  ;;  %v712_v11 = vmov 0.0   ;;  %vm713_vm1 = vmmov 0   ;;  %v431_v32 = vlaneseq }
  0x35   : > { %v245_v2 = vcombine.high %v241_v0, %v241_v0  ;;  %v246_v3 = vcombine.high %v242_v1, %v242_v1  ;;  %v250_v4 = vsel %vm249_vm0, %v241_v0, 0.0  ;;  %v253_v6 = vsel %vm249_vm0, %v242_v1, 0.0  ;;  %550 = vmatprep.subr.mxu0 %v712_v11  ;;  %555 = vmatprep.subr.mxu1 %v712_v11  ;;  %v260_v14 = vld [vmem:[%s917_s1] sm:$0xf]  ;;  %s545_s7 = sshll.u32 %s768_s22, 8  ;;  %s240_s9 = scalar_lea.vmem [#allocation5], %s532_s17 }
  0x36   : > { %552 = vmatprep.mubr.msk.f32.mxu0 %vm713_vm1, %v712_v11  ;;  %557 = vmatprep.mubr.msk.f32.mxu1 %vm713_vm1, %v712_v11  ;;  %vm262_vm2 = vcmask 31744   ;;  %v261_v15 = vld [vmem:[%s918_s2] sm:$0xf]  ;;  %v714_v21 = vmov 0   ;;  %v715_v30 = vmov 839922192   ;;  %s879_s15 = scalar_lea.hbm %s921_s5, %s545_s7 }
  0x37   : > { %v251_v5 = vsel %vm249_vm0, %v245_v2, 0.0  ;;  %v255_v8 = vsel %vm249_vm0, %v246_v3, 0.0  ;;  %v340_v20 = vld [vmem:[%s919_s3] sm:$0xf]  ;;  %610 = vset.pattern.permute.xlu0 %v714_v21  ;;  %v429_v31 = vunpack.c.l.s4 %v715_v30  ;;  %v432_v34 = vshrl.u32 %v431_v32, 7  ;;  %s455_s10 = sshll.u32 %s240_s9, 4  ;;  %s456_s10 = int_to_ptr.vmem [resolvable:$true] %s455_s10 }
  0x38   : > { %v252_v7 = vadd.f32 %v251_v5, %v250_v4  ;;  %v341_v22 = vld [vmem:[%s920_s4] sm:$0xf]  ;;  %s441_s29 = scalar_lea.sflag [#allocation4], %s845_s13  ;;  %s645_s12 = scalar_lea.vmem %s456_s10, 256 }
  0x39   : > { %v430_v33 = vunpack.c.0.s8 %v429_v31  ;;  %p646_p11 = scmp.ne.s32.totalorder %s456_s10, %s645_s12  ;;  %p932_p12 = scmp.ne.s32.totalorder %s926_s30, 0 }
  0x3a   : > { %v254_v9 = vadd.f32 %v253_v6, %v252_v7  ;;  %s716_s22 = smov [#allocation5]  }
  0x3b   : > { %v433_v35 = vsub.s32 %v430_v33, %v432_v34  ;;  %p647_p13 = pnand %p646_p11, %p932_p12  ;;  %s649_s17 = sshll.u32 %s716_s22, 4  ;;  %s650_s17 = int_to_ptr.vmem [resolvable:$false] %s649_s17 }
  0x3c   : > { %v256_v10 = vadd.f32 %v255_v8, %v254_v9  ;;  %s651_s14 = scalar_lea.vmem %s650_s17, 512  ;;  %p652_p3 = scmp.lt.s32.totalorder %s456_s10, %s650_s17 }
  0x3d   : > { %p648_p1 = pneg %p647_p13  ;;  %p653_p5 = scmp.lt.s32.totalorder %s651_s14, %s645_s12 }
  0x3e   : > { %257 = vadd.xlane.f32.xlu0 %v256_v10 }
  0x3f   : > { %p654_p8 = por %p653_p5, %p652_p3 }
  0x41   : > { %p655_p10 = pnand %p654_p8, %p648_p1 }
  0xc7   : > { %v258_v12 = vpop.xlane.xlu0 %257 }
  0xc8   : > { %v259_v13 = vmul.f32 0.001953125, %v258_v12 }
  0xca   : > { %551 = vmatpush3.msk.msra.mxu0 %vm249_vm0, %v259_v13 }
  0xcb   : > { %553 = vmatmul.mubr.msk.f32.vlgmr.msra.gmra.mxu0 %vm262_vm2, %v260_v14 }
 0x18b   : > { %v335_v16 = vpop.f32.mrf.mxu0 }
 0x18c   : > { %v336_v17 = vadd.f32 %v335_v16, %v261_v15 }
 0x18d   : > { %v554_v18 = vpop.f32.mrf.mxu0 }
 0x18e   : > { %v339_v19 = vmax.f32 %v336_v17, 0.0 }
 0x190   : > { %556 = vmatpush3.msk.msra.mxu1 %vm249_vm0, %v339_v19 }
 0x191   : > { %558 = vmatmul.mubr.msk.f32.vlgmr.msra.gmra.mxu1 %vm262_vm2, %v340_v20 }
 0x251   : > { %v414_v23 = vpop.f32.mrf.mxu1 }
 0x252   : > { %v415_v24 = vadd.f32 %v414_v23, %v341_v22 }
 0x253   : > { %v559_v25 = vpop.f32.mrf.mxu1 }
 0x254   : > { %v538_v26 = vmul.f32 -1.442695, %v415_v24 }
 0x256   : > { %613 = vpow2.f32 %v538_v26 }
 0x263   : > { %v614_v27 = vpop.eup %613 }
 0x264   : > { %v421_v28 = vadd.f32 1.0, %v614_v27 }
 0x266   : > { %615 = vrcp.f32 %v421_v28 }
 0x273   : > { %v616_v29 = vpop.eup %615 }
 0x274   : > { %426 = vperm.xlu0 %610, %v616_v29  }
 0x2ef   : > { %v427_v36 = vpop.permute.xlu0 %426 }
 0x2f0   : > { %v434_v37 = vrot.slane %v427_v36, %v433_v35 }
 0x2f2   : > { %v436_v38 = vmul.f32 %v434_v37, %v241_v0  ;;  %v437_v39 = vmul.f32 %v434_v37, %v242_v1 }
 0x2f4   : > { %438 = vst [vmem:[%s240_s9] sm:$0xff] %v436_v38  ;;  %439 = vst [vmem:[%s240_s9 + $0x8] sm:$0xff] %v437_v39 }
 0x2f5   : > { %658 = shalt.err (!%p655_p10)
}
 0x2f6   : > { %s659_s16 = scalar_lea.hbm %s879_s15, 256  ;;  %s663_s26 = scalar_lea.hbm %s921_s5, 512 }
 0x2f7   : > { %p660_p2 = scmp.ne.s32.totalorder %s879_s15, %s659_s16  ;;  %p664_p7 = scmp.lt.s32.totalorder %s879_s15, %s921_s5 }
 0x2f8   : > { %p665_p0 = scmp.lt.s32.totalorder %s663_s26, %s659_s16 }
 0x2f9   : > { %p661_p4 = pnand %p660_p2, %p932_p12 }
 0x2fa   : > { %p666_p6 = por %p665_p0, %p664_p7 }
 0x2fb   : > { %p662_p9 = pneg %p661_p4 }
 0x2fd   : > { %p667_p11 = pnand %p666_p6, %p662_p9 }
 0x2ff   : > { %670 = shalt.err (!%p667_p11)
}
 0x300   : > { %562 = dma.vmem_to_hbm [thread:$0]  (%p932_p12), %s456_s10, 256, %s879_s15, %s441_s29  }
 0x301 PF: > { %s467_s7 = sand.u32 1, %s697_s18   ;;  %p933_p13 = scmp.ne.s32.totalorder %s927_s6, 0 }
 0x302   : > { %p934_p1 = scmp.ge.s32.totalorder %s709_s21, 2  ;;  %s468_s9 = scalar_lea.sflag [#allocation4], %s467_s7 }
 0x304   : > { %p569_p3 = pnand %p934_p1, %p933_p13 }
 0x306   : > { %p570_p5 = pneg %p569_p3 }
 0x308   : > { %692 = dma.done.wait (%p570_p5), %s468_s9, 256  }
 0x309   : > { %694 = vsyncadd (%p570_p5), %s468_s9, 4294967040  ;;  %p18_p8 = scmp.ge.s32.totalorder %s772_s24, 4   ;;  %s935_s18 = smov %s701_s19 }
 0x30a   : > { %s936_s19 = smov %s705_s20  ;;  %s937_s20 = smov %s784_s27 }
 0x30b   : > { %s938_s21 = smov %s772_s24  ;;  %20 = sbr.rel (!%p18_p8) target bundleno = 5 (0x5), region = 85 }
 0x310   :  { %473 = vsyncpa [#allocation3], 1 }
 0x311   :  { %475 = vsyncpa [#allocation3 + $0x1], 1 }
 0x312   :  { %476 = vsyncpa [#allocation4], 1 }
 0x313   :  { %478 = vsyncpa [#allocation4 + $0x1], 1 }

</bundles_post_ra>
